<compile_context>
chip_gen: v5e
topology: v5e:2x2
jax: 0.10.0
libtpu: 0.0.40
codegen_flags: <defaults>
</compile_context>

<pallas_src>
import jax
import jax.numpy as jnp
from jax.experimental import pallas as pl
from jax.experimental.pallas import tpu as pltpu

LANE = 128      # vreg lane width
SUBLANE = 8     # vreg sublane count (f32)


def _round_up(x, m):
    return ((x + m - 1) // m) * m


def linear_kernel(x_ref, w_ref, b_ref, o_ref):
    # One (batch-tile, out-tile) per grid step: bf16 MXU matmul with f32
    # accumulation + VPU bias add, then a lane-dense (unmasked) store.
    acc = jnp.dot(x_ref[...], w_ref[...], preferred_element_type=jnp.float32)
    o_ref[...] = (acc + b_ref[...]).astype(o_ref.dtype)


def prepare_classifier_params(weight, bias, *, weight_dtype=jnp.bfloat16):
    """One-time (init-path) parameter preparation.

    weight: (output_dim, input_dim) f32  -- PyTorch nn.Linear layout
    bias:   (output_dim,) f32

    Returns (w_t, b2d, output_dim) where
      w_t : (input_dim, O_pad) pre-transposed, stored in `weight_dtype`
            (bf16 by default), output dim zero-padded to a multiple of 128.
      b2d : (1, O_pad) f32 bias row, zero-padded the same way.
    """
    O, D = weight.shape
    O_pad = _round_up(O, LANE)
    w_t = (jnp.zeros((D, O_pad), weight_dtype)
           .at[:, :O].set(weight.T.astype(weight_dtype)))
    b2d = (jnp.zeros((1, O_pad), jnp.float32)
           .at[0, :O].set(bias.astype(jnp.float32)))
    return w_t, b2d, O


def classifier_forward(x, w_t, b2d, output_dim, *,
                       max_tile_b=2048, max_tile_o=1024, min_split_rows=512):
    """x: (B, input_dim) f32. Returns (B, output_dim) f32 logits == x @ W^T + b
    (weights rounded to the prepared weight dtype, f32 accumulation)."""
    B, D = x.shape
    O_pad = w_t.shape[1]

    # ---- batch tiling: even split, <=7 padded rows per tile ----
    n_b = pl.cdiv(B, max_tile_b)
    if B >= 2 * min_split_rows:
        # v7x: keep >=2 (even) parallel steps so both TensorCores get work.
        n_b = max(n_b, 2)
    if n_b > 1 and (n_b % 2):
        n_b += 1
    TB = _round_up(pl.cdiv(B, n_b), SUBLANE)
    B_pad = n_b * TB

    # ---- output tiling: TN = largest multiple of 128 <= max_tile_o that
    # divides O_pad (falls back to 128, which always divides O_pad) ----
    TN = min(_round_up(max_tile_o, LANE), O_pad)
    while O_pad % TN:
        TN -= LANE
    n_o = O_pad // TN

    # Feed activations in the weight dtype (bf16): halves x DMA bytes and
    # keeps the matmul on the native bf16 MXU path.
    x_in = x.astype(w_t.dtype)
    if B_pad != B:
        x_in = jnp.pad(x_in, ((0, B_pad - B), (0, 0)))

    # Scoped-VMEM sized from the actual double-buffered tiles (+ headroom);
    # matters on v5e whose default scoped limit is only 16 MiB.
    tile_bytes = (TB * D * x_in.dtype.itemsize
                  + D * TN * w_t.dtype.itemsize
                  + TN * b2d.dtype.itemsize
                  + TB * TN * 4)
    vmem_limit = int(min(2 * tile_bytes + (8 << 20), 64 << 20))

    out = pl.pallas_call(
        linear_kernel,
        out_shape=jax.ShapeDtypeStruct((B_pad, O_pad), jnp.float32),
        grid=(n_b, n_o),
        in_specs=[
            pl.BlockSpec((TB, D), lambda i, j: (i, 0)),    # batch tile of x
            pl.BlockSpec((D, TN), lambda i, j: (0, j)),    # weight column tile
            pl.BlockSpec((1, TN), lambda i, j: (0, j)),    # bias row tile
        ],
        out_specs=pl.BlockSpec((TB, TN), lambda i, j: (i, j)),
        compiler_params=pltpu.CompilerParams(
            # both axes independent -> parallel (sharded across TCs on v7x).
            dimension_semantics=("parallel", "parallel"),
            vmem_limit_bytes=vmem_limit),
    )(x_in, w_t, b2d)

    # Cheap un-pad back to the real logits shape.
    return out[:B, :output_dim]


if __name__ == "__main__":
    # Small shapes consistent with the module: word-vector dim -> 14 classes.
    batch = 8
    input_dim = 32      # len(word_vectors[0]) in the original script
    output_dim = 14

    key = jax.random.PRNGKey(0)
    kx, kw, kb = jax.random.split(key, 3)

    # Deterministic synthetic "word vectors" batch.
    x = jax.random.normal(kx, (batch, input_dim), dtype=jnp.float32)

    # Deterministic nn.Linear-style init: U(-1/sqrt(fan_in), 1/sqrt(fan_in)).
    bound = 1.0 / (input_dim ** 0.5)
    weight = jax.random.uniform(kw, (output_dim, input_dim),
                                minval=-bound, maxval=bound,
                                dtype=jnp.float32)
    bias = jax.random.uniform(kb, (output_dim,),
                              minval=-bound, maxval=bound,
                              dtype=jnp.float32)

    # One-time parameter prep (transpose + lane padding + bf16) off call path.
    w_t, b2d, out_dim = prepare_classifier_params(weight, bias)

    out = classifier_forward(x, w_t, b2d, out_dim)
    out = jax.block_until_ready(out)
    assert out.shape == (batch, output_dim)

    # Reference of the same math at the same precision (bf16 inputs/weights,
    # f32 accumulation) for a tight check of the kernel mechanics.
    xb = x.astype(jnp.bfloat16).astype(jnp.float32)
    wb = weight.astype(jnp.bfloat16).astype(jnp.float32)
    ref = xb @ wb.T + bias
    assert jnp.allclose(out, ref, atol=1e-3, rtol=1e-3)

    # Also sanity-check against the exact f32 nn.Linear math (bf16 tolerance).
    ref_f32 = x @ weight.T + bias
    assert jnp.allclose(out, ref_f32, atol=3e-2, rtol=3e-2)

    print("KERNEL_OK")
</pallas_src>

<mosaic_0001>
module attributes {stable_mosaic.version = 11 : i64} {
  func.func @linear_kernel(%arg0: i32, %arg1: i32, %arg2: memref<8x32xbf16, #tpu.memory_space<vmem>>, %arg3: memref<32x128xbf16, #tpu.memory_space<vmem>>, %arg4: memref<1x128xf32, #tpu.memory_space<vmem>>, %arg5: memref<8x128xf32, #tpu.memory_space<vmem>>) attributes {dimension_semantics = [#tpu.dimension_semantics<parallel>, #tpu.dimension_semantics<parallel>], iteration_bounds = array<i64: 1, 1>, scalar_prefetch = 0 : i64, scratch_operands = 0 : i64, tpu.core_type = #tpu.core_type<tc>, window_params = [{transform_indices = @transform_0, window_bounds = array<i64: 8, 32>}, {transform_indices = @transform_1, window_bounds = array<i64: 32, 128>}, {transform_indices = @transform_2, window_bounds = array<i64: 1, 128>}, {transform_indices = @transform_3, window_bounds = array<i64: 8, 128>}]} {
    %c0 = arith.constant 0 : index
    %c0_0 = arith.constant 0 : index
    %0 = vector.load %arg2[%c0, %c0_0] : memref<8x32xbf16, #tpu.memory_space<vmem>>, vector<8x32xbf16>
    %c0_1 = arith.constant 0 : index
    %c0_2 = arith.constant 0 : index
    %1 = vector.load %arg3[%c0_1, %c0_2] : memref<32x128xbf16, #tpu.memory_space<vmem>>, vector<32x128xbf16>
    %cst = arith.constant dense<0.000000e+00> : vector<8x128xf32>
    %2 = tpu.matmul %0, %1, %cst {dimension_numbers = #tpu.dot_dimension_numbers<[1], [0], [0], [1], [0, 0, 1, 1], [], []>} : vector<8x32xbf16>, vector<32x128xbf16>, vector<8x128xf32> -> vector<8x128xf32>
    %c0_3 = arith.constant 0 : index
    %c0_4 = arith.constant 0 : index
    %3 = vector.load %arg4[%c0_3, %c0_4] : memref<1x128xf32, #tpu.memory_space<vmem>>, vector<1x128xf32>
    %4 = vector.broadcast %3 : vector<1x128xf32> to vector<8x128xf32>
    %5 = arith.addf %2, %4 : vector<8x128xf32>
    %c0_5 = arith.constant 0 : index
    %c0_6 = arith.constant 0 : index
    %6 = vector.load %arg5[%c0_5, %c0_6] : memref<8x128xf32, #tpu.memory_space<vmem>>, vector<8x128xf32>
    tpu.vector_store %arg5[%c0_5, %c0_6], %5 {strides = array<i32>} : memref<8x128xf32, #tpu.memory_space<vmem>>, vector<8x128xf32>,
    return
  }
  func.func @transform_0(%arg0: i32, %arg1: i32) -> (i32, i32) {
    %c0_i32 = arith.constant 0 : i32
    %c0_i32_0 = arith.constant 0 : i32
    return %arg0, %c0_i32 : i32, i32
  }
  func.func @transform_1(%arg0: i32, %arg1: i32) -> (i32, i32) {
    %c0_i32 = arith.constant 0 : i32
    %c0_i32_0 = arith.constant 0 : i32
    return %c0_i32, %arg1 : i32, i32
  }
  func.func @transform_2(%arg0: i32, %arg1: i32) -> (i32, i32) {
    %c0_i32 = arith.constant 0 : i32
    %c0_i32_0 = arith.constant 0 : i32
    return %c0_i32, %arg1 : i32, i32
  }
  func.func @transform_3(%arg0: i32, %arg1: i32) -> (i32, i32) {
    %c0_i32 = arith.constant 0 : i32
    return %arg0, %arg1 : i32, i32
  }
}

</mosaic_0001>

<bundles_post_ra>
// kernel: tpu_custom_call.1
= control target key start
LH: loop header
LB: loop body
LE: loop exit
PB: predicated region body
PF: predicated region fallthrough
CT: control target
= control target key end

     0   :  { %8 = vsyncpa [#allocation3], 0  ;;  %s235_s0 = inlined_call_operand.hbm [shape: bf16[8,32], index: 0, kind: input, shape index: {}]   ;;  %s236_s1 = inlined_call_operand.hbm [shape: bf16[32,128], index: 1, kind: input, shape index: {}]   ;;  %s237_s2 = inlined_call_operand.vmem [shape: f32[1,128], index: 2, kind: input, shape index: {}]   ;;  %s238_s3 = inlined_call_operand.hbm [shape: f32[8,128], index: 3, kind: output, shape index: {}]  }
   0x1   :  { %9 = vsyncpa [#allocation6], 0 }
   0x2   :  { %10 = vsyncpa [#allocation4], 0  ;;  %s16_s14 = sshll.u32 %s235_s0, 4  ;;  %s198_s15 = smov [#allocation2]   ;;  %s17_s14 = int_to_ptr.hbm [resolvable:$true] %s16_s14 }
   0x3   :  { %s18_s16 = sshll.u32 %s198_s15, 4  ;;  %s26_s19 = sshll.u32 %s236_s1, 4  ;;  %s19_s16 = int_to_ptr.vmem [resolvable:$true] %s18_s16  ;;  %s27_s19 = int_to_ptr.hbm [resolvable:$true] %s26_s19 }
   0x4   :  { %21 = dma.hbm_to_vmem [thread:$0]  %s17_s14, 64, %s19_s16, [#allocation3]  }
   0x5   :  { %s199_s20 = smov [#allocation5]   ;;  %s200_s22 = smov 64  }
   0x6   :  { %s28_s21 = sshll.u32 %s199_s20, 4  ;;  %s201_s23 = smov 4   ;;  %s29_s21 = int_to_ptr.vmem [resolvable:$true] %s28_s21 }
   0x7   :  { %34 = dma.hbm_to_vmem [thread:$0]  %s27_s19, 256, %s29_s21, [#allocation6], %s200_s22, %s200_s22, %s201_s23  }
   0x8   :  { %192 = dma.done.wait [#allocation3], 64  }
   0x9   :  { %193 = vsyncadd [#allocation3], 4294967232 }
   0xa   :  { %194 = dma.done.wait [#allocation6], 256  }
   0xb   :  { %195 = vsyncadd [#allocation6], 4294967040  ;;  %v113_v0 = vld [vmem:[#allocation5 + $0x8] sm:$0xff]  ;;  %v112_v1 = vld [vmem:[#allocation5] sm:$0xff]  ;;  %vm67_vm0 = vcmask 261120   ;;  %s202_s24 = smov [#allocation7]  }
   0xc   :  { %77 = vmatpush.bf16.msra.mxu0 %v113_v0  ;;  %v46_v2 = vld [vmem:[#allocation2] sm:$0xf]  ;;  %s90_s25 = sshll.u32 %s202_s24, 4  ;;  %s92_s28 = sshll.u32 %s238_s3, 4  ;;  %s91_s25 = int_to_ptr.vmem [resolvable:$true] %s90_s25  ;;  %s93_s28 = int_to_ptr.hbm [resolvable:$true] %s92_s28 }
   0xd   :  { %v119_v3 = vld [vmem:[%s237_s2] ss:$0 sm:$0xff] }
  0x10   :  { %78 = vmatpush.bf16.msra.mxu0 %v112_v1 }
  0x13   :  { %111 = vmatmul.msk.bf16.vlgmr.msra.gmra.mxu0 %vm67_vm0, %v46_v2 }
  0x90   :  { %v80_v4 = vpop.f32.mrf.mxu0 }
  0x91   :  { %v81_v5 = vadd.f32 %v119_v3, %v80_v4 }
  0x93   :  { %84 = vst [vmem:[#allocation7] sm:$0xff] %v81_v5 }
  0x94   :  { %95 = dma.vmem_to_hbm [thread:$0]  %s91_s25, 128, %s93_s28, [#allocation4]  }
  0x98   :  { %v82_v6 = vpop.f32.mrf.mxu0 }
  0x99   :  { %196 = dma.done.wait [#allocation4], 128  }
  0x9a   :  { %197 = vsyncadd [#allocation4], 4294967168 }
  0x9b   :  { %100 = vsyncpa [#allocation3], 1 }
  0x9c   :  { %101 = vsyncpa [#allocation6], 1 }
  0x9d   :  { %102 = vsyncpa [#allocation4], 1 }

</bundles_post_ra>
